<compile_context>
chip_gen: v7x
topology: tpu7x:2x2x1
jax: 0.10.0
libtpu: 0.0.40
codegen_flags: <defaults>
</compile_context>

<pallas_src>
import functools

import jax
import jax.numpy as jnp
from jax import lax
from jax.experimental import pallas as pl
from jax.experimental.pallas import tpu as pltpu


def _round_up(x, m):
    return ((x + m - 1) // m) * m


# -----------------------------------------------------------------------------
# Fused kernel: runs a group of ResBlocks (x = x + conv_chain(x) per block)
# for one (batch, time-tile) grid cell.  NCW layout, time on the lane axis.
# -----------------------------------------------------------------------------
def _mrf_kernel(*refs, nblk, Ks, dils, tT, T, HL, HR, HP, has_halo, dot_dtype):
    # refs = [x_tile, (lhalo, rhalo)?, w_0, b_0, ..., w_{nblk-1}, b_{nblk-1}, out]
    idx = 0
    x_ref = refs[idx]; idx += 1
    if has_halo:
        lh_ref = refs[idx]
        rh_ref = refs[idx + 1]
        idx += 2
    w_refs, b_refs = [], []
    for _ in range(nblk):
        w_refs.append(refs[idx])
        b_refs.append(refs[idx + 1])
        idx += 2
    out_ref = refs[idx]

    f32 = jnp.float32
    j = pl.program_id(1)
    nT = pl.num_programs(1)
    t0 = j * tT

    core = x_ref[0].astype(f32)                       # (C, tT)
    C = core.shape[0]

    # Assemble the working window [left halo | core | right halo] once.
    # Halo blocks are auto-pipelined neighbour tiles; at the sequence ends they
    # are replaced by zeros ('same' conv padding; LeakyReLU(0) == 0).
    pieces = []
    if HL > 0:
        if has_halo:
            lw = lh_ref[0, :, HP - HL:].astype(f32) * (j > 0).astype(f32)
        else:
            lw = jnp.zeros((C, HL), f32)
        pieces.append(lw)
    pieces.append(core)
    if HR > 0:
        if has_halo:
            rw = rh_ref[0, :, :HR].astype(f32) * (j < nT - 1).astype(f32)
        else:
            rw = jnp.zeros((C, HR), f32)
        pieces.append(rw)
    cur = jnp.concatenate(pieces, axis=-1) if len(pieces) > 1 else core

    # 0/1 validity of every window column w.r.t. the true sequence [0, T),
    # computed once (iota + compares hoisted out of the layer loop).
    W0 = HL + tT + HR
    gpos = t0 - HL + lax.broadcasted_iota(jnp.int32, (1, W0), 1)
    valid = ((gpos >= 0) & (gpos < T)).astype(f32)    # (1, W0)

    width = W0
    off = 0                                           # left columns consumed so far
    for n in range(nblk):
        K = Ks[n]
        res_in = cur
        blk_off = 0
        for m, d in enumerate(dils[n]):
            pad_l = (d * (K - 1)) // 2
            a = jnp.where(cur >= 0, cur, f32(0.1) * cur).astype(dot_dtype)
            w_out = width - d * (K - 1)
            # K accumulating MXU dots against shifted views (no K-way concat /
            # no (K*C, w) intermediate).
            y = jnp.dot(w_refs[n][m, 0].astype(dot_dtype), a[:, :w_out],
                        preferred_element_type=f32)
            for k in range(1, K):
                y = y + jnp.dot(w_refs[n][m, k].astype(dot_dtype),
                                a[:, k * d:k * d + w_out],
                                preferred_element_type=f32)
            cur = y + b_refs[n][m].astype(f32)        # (C, 1) bias broadcast
            off += pad_l
            blk_off += pad_l
            width = w_out
            # Re-apply the 'same' zero padding at the true sequence boundary
            # so chained convs / blocks never see non-zero padding positions.
            # TODO(synk): gate this on boundary tiles only (see module header).
            cur = cur * valid[:, off:off + width]
        # Residual: out = x + resblock(x), aligned to the block-entry window.
        cur = cur + res_in[:, blk_off:blk_off + width]

    out_ref[0] = cur.astype(out_ref.dtype)


# -----------------------------------------------------------------------------
# Planning helpers
# -----------------------------------------------------------------------------
def _chip_budgets():
    """Per-generation tile / VMEM budgets (v5e/v6e: 128 MiB VMEM, v7x: 64 MiB)."""
    vmem_cap = 64 * 2 ** 20
    try:
        info = pltpu.get_tpu_info()
        vmem_cap = int(getattr(info, "vmem_capacity_bytes", vmem_cap))
    except Exception:
        pass
    if vmem_cap >= 100 * 2 ** 20:     # v5e / v6e class parts
        return {"max_tile_t": 2048,
                "vmem_limit": 96 * 2 ** 20,
                "vmem_budget": 80 * 2 ** 20}
    # v7x class parts (64 MiB per TensorCore) - smaller tiles, tighter budget.
    return {"max_tile_t": 1024,
            "vmem_limit": 48 * 2 ** 20,
            "vmem_budget": 40 * 2 ** 20}


def _halo_sizes(group):
    HL = HR = 0
    for blk in group:
        K = blk["K"]
        for d in blk["dils"]:
            tot = d * (K - 1)
            HL += tot // 2
            HR += tot - tot // 2
    return HL, HR


def _est_vmem_bytes(group, C, tT):
    """Rough per-call VMEM estimate used only for planning."""
    HL, HR = _halo_sizes(group)
    W0 = tT + HL + HR
    b = 2 * 2 * C * tT * 4            # in + out tiles, double-buffered, f32
    b += 2 * 2 * C * 256 * 4          # halo tiles
    for blk in group:
        M = len(blk["dils"])
        K = blk["K"]
        b += 2 * M * K * C * C * blk["w"].dtype.itemsize   # resident weights
        b += 2 * M * C * 4
    b += 5 * C * W0 * 4               # in-kernel working values
    return b


def _pack_blocks(params, D_r, C, dot_dtype):
    """Pack per-layer torch-layout (C_out, C_in, K) weights as (M, K, C, C)."""
    blocks = []
    for i, dil in enumerate(D_r):
        K = int(params[i][0][0].shape[-1])
        w = jnp.stack([jnp.transpose(wm, (2, 0, 1)) for wm, _ in params[i]],
                      0).astype(dot_dtype)                     # (M, K, C, C)
        b = jnp.stack([bm.reshape(C, 1) for _, bm in params[i]],
                      0).astype(jnp.float32)                   # (M, C, 1)
        blocks.append({"K": K, "dils": tuple(int(d) for d in dil),
                       "w": w, "b": b})
    return blocks


# -----------------------------------------------------------------------------
# One fused pallas_call over a group of ResBlocks.
# -----------------------------------------------------------------------------
def _mrf_group_call(x, group, *, T_true, tT, dot_dtype, vmem_limit):
    B, C, T_pad = x.shape
    assert T_pad % tT == 0, (T_pad, tT)
    nT = T_pad // tT
    HL, HR = _halo_sizes(group)
    maxH = max(HL, HR)

    has_halo = (nT > 1) and (maxH > 0)
    HP = 0
    if has_halo:
        assert tT % 128 == 0
        assert maxH <= tT, (
            f"time tile {tT} is smaller than the receptive-field halo {maxH}")
        HP = _round_up(maxH, 128)
        while tT % HP != 0:          # halo block width must divide the tile
            HP += 128

    nblk = len(group)
    Ks = tuple(blk["K"] for blk in group)
    dils = tuple(blk["dils"] for blk in group)

    kernel = functools.partial(
        _mrf_kernel, nblk=nblk, Ks=Ks, dils=dils, tT=tT, T=T_true,
        HL=HL, HR=HR, HP=HP, has_halo=has_halo, dot_dtype=dot_dtype)

    in_specs = [pl.BlockSpec((1, C, tT), lambda b, j: (b, 0, j))]   # core tile
    inputs = [x]
    if has_halo:
        r = tT // HP
        last = T_pad // HP - 1
        # Left / right neighbour halo blocks of the SAME array: full 128-lane
        # blocks, prefetched + double-buffered by the standard Pallas pipeline
        # (replaces the synchronous strided halo DMAs of the previous version).
        in_specs.append(pl.BlockSpec(
            (1, C, HP),
            lambda b, j, r=r: (b, 0, jnp.maximum(j * r - 1, 0))))
        in_specs.append(pl.BlockSpec(
            (1, C, HP),
            lambda b, j, r=r, last=last: (b, 0, jnp.minimum((j + 1) * r, last))))
        inputs += [x, x]
    for blk in group:
        M = len(blk["dils"])
        K = blk["K"]
        in_specs.append(pl.BlockSpec((M, K, C, C), lambda b, j: (0, 0, 0, 0)))
        in_specs.append(pl.BlockSpec((M, C, 1), lambda b, j: (0, 0, 0)))
        inputs += [blk["w"], blk["b"]]

    return pl.pallas_call(
        kernel,
        out_shape=jax.ShapeDtypeStruct((B, C, T_pad), x.dtype),
        grid=(B, nT),
        in_specs=in_specs,
        out_specs=pl.BlockSpec((1, C, tT), lambda b, j: (b, 0, j)),
        compiler_params=pltpu.CompilerParams(
            dimension_semantics=("parallel", "parallel"),
            vmem_limit_bytes=vmem_limit),
    )(*inputs)


# -----------------------------------------------------------------------------
# MRF forward (matches the PyTorch module semantics), NCW layout throughout.
# -----------------------------------------------------------------------------
def mrf_forward(x_bct, params, D_r, *, dot_dtype=jnp.bfloat16, tile_t=None,
                vmem_budget_bytes=None):
    """x_bct: (B, C, T).  params[i][m] = (weight (C, C, K_i), bias (C,))."""
    B, C, T = x_bct.shape
    budgets = _chip_budgets()
    budget = (int(vmem_budget_bytes) if vmem_budget_bytes is not None
              else budgets["vmem_budget"])

    blocks = _pack_blocks(params, D_r, C, dot_dtype)

    # ---- choose the time tile (never a full-T block for long sequences) ----
    if tile_t is not None:
        tT = int(tile_t)
        if tT >= T:
            tT = T
        else:
            assert tT % 128 == 0, "tile_t must be a multiple of 128 when tiling"
    else:
        tT = T if T <= budgets["max_tile_t"] else budgets["max_tile_t"]
        while tT > 128:
            if max(_est_vmem_bytes([blk], C, tT) for blk in blocks) <= budget:
                break
            new_tT = max(128, (tT // 2 // 128) * 128)
            if new_tT == tT:
                break
            tT = new_tT

    T_pad = _round_up(T, tT) if tT < T else T

    # ---- group ResBlocks so each call's resident weights + tiles fit VMEM ----
    groups, cur = [], []
    for blk in blocks:
        trial = cur + [blk]
        if cur and _est_vmem_bytes(trial, C, tT) > budget:
            groups.append(cur)
            cur = [blk]
        else:
            cur = trial
    groups.append(cur)

    y = x_bct if T_pad == T else jnp.pad(
        x_bct, ((0, 0), (0, 0), (0, T_pad - T)))
    for group in groups:
        y = _mrf_group_call(y, group, T_true=T, tT=tT, dot_dtype=dot_dtype,
                            vmem_limit=budgets["vmem_limit"])
    return y if T_pad == T else y[..., :T]


# -----------------------------------------------------------------------------
# Pure-JAX reference (for verification only)
# -----------------------------------------------------------------------------
def mrf_reference(x_bct, params, D_r):
    x = x_bct
    for i, dilations in enumerate(D_r):
        y = x
        for m, d in enumerate(dilations):
            w, bb = params[i][m]                      # (C_out, C_in, K)
            K = w.shape[-1]
            total = d * (K - 1)
            p_l, p_r = total // 2, total - total // 2
            yl = jnp.where(y >= 0, y, 0.1 * y)
            y = lax.conv_general_dilated(
                yl, w, window_strides=(1,), padding=[(p_l, p_r)],
                rhs_dilation=(d,), dimension_numbers=("NCH", "OIH", "NCH"))
            y = y + bb[None, :, None]
        x = x + y
    return x


def init_mrf_params(key, channels, k_r, D_r):
    """Deterministic synthetic params in PyTorch Conv1d layout (C_out, C_in, K)."""
    params = []
    for i, dilations in enumerate(D_r):
        K = k_r[i]
        block = []
        for _ in dilations:
            key, kw, kb = jax.random.split(key, 3)
            scale = 1.0 / jnp.sqrt(channels * K)
            w = jax.random.uniform(kw, (channels, channels, K), jnp.float32,
                                   -scale, scale)
            b = jax.random.uniform(kb, (channels,), jnp.float32, -scale, scale)
            block.append((w, b))
        params.append(block)
    return params


if __name__ == "__main__":
    B, C, T = 2, 16, 64
    k_r = [3, 5]
    D_r = [[1, 3], [1, 2]]

    key = jax.random.PRNGKey(0)
    key, kx = jax.random.split(key)
    x = jax.random.normal(kx, (B, C, T), jnp.float32)
    params = init_mrf_params(key, C, k_r, D_r)

    ref = jax.block_until_ready(mrf_reference(x, params, D_r))

    # f32 MXU operands, single time tile, whole MRF fused in one pallas_call.
    out = jax.block_until_ready(mrf_forward(x, params, D_r, dot_dtype=jnp.float32))
    assert out.shape == (B, C, T)
    assert jnp.allclose(out, ref, atol=5e-4, rtol=5e-4), float(
        jnp.max(jnp.abs(out - ref)))

    # bf16 MXU operands (f32 accumulation) - the fast path on v5e/v6e/v7x.
    out_bf16 = jax.block_until_ready(
        mrf_forward(x, params, D_r, dot_dtype=jnp.bfloat16))
    assert jnp.allclose(out_bf16, ref, atol=5e-2, rtol=5e-2), float(
        jnp.max(jnp.abs(out_bf16 - ref)))

    # Time-tiled path: pipelined halo blocks + in-kernel boundary masking.
    T2 = 512
    key, kx2 = jax.random.split(key)
    x2 = jax.random.normal(kx2, (B, C, T2), jnp.float32)
    ref2 = jax.block_until_ready(mrf_reference(x2, params, D_r))
    out2 = jax.block_until_ready(
        mrf_forward(x2, params, D_r, dot_dtype=jnp.float32, tile_t=128))
    assert jnp.allclose(out2, ref2, atol=5e-4, rtol=5e-4), float(
        jnp.max(jnp.abs(out2 - ref2)))

    # Ragged T: wrapper pads to a tile multiple, kernel re-zeroes past true T.
    T3 = 400
    key, kx3 = jax.random.split(key)
    x3 = jax.random.normal(kx3, (B, C, T3), jnp.float32)
    ref3 = jax.block_until_ready(mrf_reference(x3, params, D_r))
    out3 = jax.block_until_ready(
        mrf_forward(x3, params, D_r, dot_dtype=jnp.float32, tile_t=128))
    assert out3.shape == (B, C, T3)
    assert jnp.allclose(out3, ref3, atol=5e-4, rtol=5e-4), float(
        jnp.max(jnp.abs(out3 - ref3)))

    # Forced per-ResBlock grouping (chained calls, as used for large-C configs).
    out4 = jax.block_until_ready(
        mrf_forward(x3, params, D_r, dot_dtype=jnp.float32, tile_t=128,
                    vmem_budget_bytes=1))
    assert jnp.allclose(out4, ref3, atol=5e-4, rtol=5e-4), float(
        jnp.max(jnp.abs(out4 - ref3)))

    print("KERNEL_OK")
</pallas_src>

<mosaic_0001>
module attributes {stable_mosaic.version = 11 : i64} {
  func.func @_mrf_kernel(%arg0: i32, %arg1: i32, %arg2: memref<1x16x64xf32, #tpu.memory_space<vmem>>, %arg3: memref<2x3x16x16xf32, #tpu.memory_space<vmem>>, %arg4: memref<2x16x1xf32, #tpu.memory_space<vmem>>, %arg5: memref<2x5x16x16xf32, #tpu.memory_space<vmem>>, %arg6: memref<2x16x1xf32, #tpu.memory_space<vmem>>, %arg7: memref<1x16x64xf32, #tpu.memory_space<vmem>>) attributes {dimension_semantics = [#tpu.dimension_semantics<parallel>, #tpu.dimension_semantics<parallel>], iteration_bounds = array<i64: 2, 1>, scalar_prefetch = 0 : i64, scratch_operands = 0 : i64, tpu.core_type = #tpu.core_type<tc>, window_params = [{transform_indices = @transform_0, window_bounds = array<i64: 1, 16, 64>}, {pipeline_mode = #tpu.pipeline_mode<synchronous>, transform_indices = @transform_1, window_bounds = array<i64: 2, 3, 16, 16>}, {pipeline_mode = #tpu.pipeline_mode<synchronous>, transform_indices = @transform_2, window_bounds = array<i64: 2, 16, 1>}, {pipeline_mode = #tpu.pipeline_mode<synchronous>, transform_indices = @transform_3, window_bounds = array<i64: 2, 5, 16, 16>}, {pipeline_mode = #tpu.pipeline_mode<synchronous>, transform_indices = @transform_4, window_bounds = array<i64: 2, 16, 1>}, {transform_indices = @transform_5, window_bounds = array<i64: 1, 16, 64>}]} {
    %c64_i32 = arith.constant 64 : i32
    %0 = arith.muli %arg1, %c64_i32 : i32
    %c0 = arith.constant 0 : index
    %c0_0 = arith.constant 0 : index
    %c0_1 = arith.constant 0 : index
    %1 = vector.load %arg2[%c0, %c0_0, %c0_1] : memref<1x16x64xf32, #tpu.memory_space<vmem>>, vector<1x16x64xf32>
    %2 = vector.shape_cast %1 : vector<1x16x64xf32> to vector<16x64xf32>
    %cst = arith.constant 0.000000e+00 : f32
    %3 = vector.broadcast %cst : f32 to vector<16x10xf32>
    %cst_2 = arith.constant 0.000000e+00 : f32
    %4 = vector.broadcast %cst_2 : f32 to vector<16x10xf32>
    %5 = tpu.concatenate %3, %2, %4 in 1 : vector<16x10xf32>, vector<16x64xf32>, vector<16x10xf32> -> vector<16x84xf32>
    %c10_i32 = arith.constant 10 : i32
    %6 = arith.subi %0, %c10_i32 : i32
    %7 = tpu.iota {dimensions = array<i32: 1>} : vector<1x84xi32>
    %8 = vector.broadcast %6 : i32 to vector<1x84xi32>
    %9 = arith.addi %8, %7 : vector<1x84xi32>
    %c0_i32 = arith.constant 0 : i32
    %10 = vector.broadcast %c0_i32 : i32 to vector<1x84xi32>
    %11 = arith.cmpi sge, %9, %10 : vector<1x84xi32>
    %c64_i32_3 = arith.constant 64 : i32
    %12 = vector.broadcast %c64_i32_3 : i32 to vector<1x84xi32>
    %13 = arith.cmpi slt, %9, %12 : vector<1x84xi32>
    %14 = arith.andi %11, %13 : vector<1x84xi1>
    %15 = arith.extui %14 : vector<1x84xi1> to vector<1x84xi32>
    %16 = arith.sitofp %15 : vector<1x84xi32> to vector<1x84xf32>
    %cst_4 = arith.constant 0.000000e+00 : f32
    %17 = vector.broadcast %cst_4 : f32 to vector<16x84xf32>
    %18 = arith.cmpf oge, %5, %17 : vector<16x84xf32>
    %cst_5 = arith.constant 1.000000e-01 : f32
    %19 = vector.broadcast %cst_5 : f32 to vector<16x84xf32>
    %20 = arith.mulf %19, %5 : vector<16x84xf32>
    %21 = arith.select %18, %5, %20 : vector<16x84xi1>, vector<16x84xf32>
    %c0_6 = arith.constant 0 : index
    %c0_7 = arith.constant 0 : index
    %c0_8 = arith.constant 0 : index
    %c0_9 = arith.constant 0 : index
    %22 = vector.load %arg3[%c0_6, %c0_7, %c0_8, %c0_9] : memref<2x3x16x16xf32, #tpu.memory_space<vmem>>, vector<1x1x16x16xf32>
    %23 = vector.shape_cast %22 : vector<1x1x16x16xf32> to vector<16x16xf32>
    %24 = vector.extract_strided_slice %21 {offsets = [0, 0], sizes = [16, 82], strides = [1, 1]} : vector<16x84xf32> to vector<16x82xf32>
    %cst_10 = arith.constant dense<0.000000e+00> : vector<16x82xf32>
    %25 = tpu.matmul %23, %24, %cst_10 {dimension_numbers = #tpu.dot_dimension_numbers<[1], [0], [0], [1], [0, 0, 1, 1], [], []>} : vector<16x16xf32>, vector<16x82xf32>, vector<16x82xf32> -> vector<16x82xf32>
    %c0_11 = arith.constant 0 : index
    %c1 = arith.constant 1 : index
    %c0_12 = arith.constant 0 : index
    %c0_13 = arith.constant 0 : index
    %26 = vector.load %arg3[%c0_11, %c1, %c0_12, %c0_13] : memref<2x3x16x16xf32, #tpu.memory_space<vmem>>, vector<1x1x16x16xf32>
    %27 = vector.shape_cast %26 : vector<1x1x16x16xf32> to vector<16x16xf32>
    %28 = vector.extract_strided_slice %21 {offsets = [0, 1], sizes = [16, 82], strides = [1, 1]} : vector<16x84xf32> to vector<16x82xf32>
    %cst_14 = arith.constant dense<0.000000e+00> : vector<16x82xf32>
    %29 = tpu.matmul %27, %28, %cst_14 {dimension_numbers = #tpu.dot_dimension_numbers<[1], [0], [0], [1], [0, 0, 1, 1], [], []>} : vector<16x16xf32>, vector<16x82xf32>, vector<16x82xf32> -> vector<16x82xf32>
    %30 = arith.addf %25, %29 : vector<16x82xf32>
    %c0_15 = arith.constant 0 : index
    %c2 = arith.constant 2 : index
    %c0_16 = arith.constant 0 : index
    %c0_17 = arith.constant 0 : index
    %31 = vector.load %arg3[%c0_15, %c2, %c0_16, %c0_17] : memref<2x3x16x16xf32, #tpu.memory_space<vmem>>, vector<1x1x16x16xf32>
    %32 = vector.shape_cast %31 : vector<1x1x16x16xf32> to vector<16x16xf32>
    %33 = vector.extract_strided_slice %21 {offsets = [0, 2], sizes = [16, 82], strides = [1, 1]} : vector<16x84xf32> to vector<16x82xf32>
    %cst_18 = arith.constant dense<0.000000e+00> : vector<16x82xf32>
    %34 = tpu.matmul %32, %33, %cst_18 {dimension_numbers = #tpu.dot_dimension_numbers<[1], [0], [0], [1], [0, 0, 1, 1], [], []>} : vector<16x16xf32>, vector<16x82xf32>, vector<16x82xf32> -> vector<16x82xf32>
    %35 = arith.addf %30, %34 : vector<16x82xf32>
    %c0_19 = arith.constant 0 : index
    %c0_20 = arith.constant 0 : index
    %c0_21 = arith.constant 0 : index
    %36 = vector.load %arg4[%c0_19, %c0_20, %c0_21] : memref<2x16x1xf32, #tpu.memory_space<vmem>>, vector<1x16x1xf32>
    %37 = vector.shape_cast %36 : vector<1x16x1xf32> to vector<16x1xf32>
    %38 = vector.broadcast %37 : vector<16x1xf32> to vector<16x82xf32>
    %39 = arith.addf %35, %38 : vector<16x82xf32>
    %40 = vector.extract_strided_slice %16 {offsets = [0, 1], sizes = [1, 82], strides = [1, 1]} : vector<1x84xf32> to vector<1x82xf32>
    %41 = vector.broadcast %40 : vector<1x82xf32> to vector<16x82xf32>
    %42 = arith.mulf %39, %41 : vector<16x82xf32>
    %cst_22 = arith.constant 0.000000e+00 : f32
    %43 = vector.broadcast %cst_22 : f32 to vector<16x82xf32>
    %44 = arith.cmpf oge, %42, %43 : vector<16x82xf32>
    %cst_23 = arith.constant 1.000000e-01 : f32
    %45 = vector.broadcast %cst_23 : f32 to vector<16x82xf32>
    %46 = arith.mulf %45, %42 : vector<16x82xf32>
    %47 = arith.select %44, %42, %46 : vector<16x82xi1>, vector<16x82xf32>
    %c1_24 = arith.constant 1 : index
    %c0_25 = arith.constant 0 : index
    %c0_26 = arith.constant 0 : index
    %c0_27 = arith.constant 0 : index
    %48 = vector.load %arg3[%c1_24, %c0_25, %c0_26, %c0_27] : memref<2x3x16x16xf32, #tpu.memory_space<vmem>>, vector<1x1x16x16xf32>
    %49 = vector.shape_cast %48 : vector<1x1x16x16xf32> to vector<16x16xf32>
    %50 = vector.extract_strided_slice %47 {offsets = [0, 0], sizes = [16, 76], strides = [1, 1]} : vector<16x82xf32> to vector<16x76xf32>
    %cst_28 = arith.constant dense<0.000000e+00> : vector<16x76xf32>
    %51 = tpu.matmul %49, %50, %cst_28 {dimension_numbers = #tpu.dot_dimension_numbers<[1], [0], [0], [1], [0, 0, 1, 1], [], []>} : vector<16x16xf32>, vector<16x76xf32>, vector<16x76xf32> -> vector<16x76xf32>
    %c1_29 = arith.constant 1 : index
    %c1_30 = arith.constant 1 : index
    %c0_31 = arith.constant 0 : index
    %c0_32 = arith.constant 0 : index
    %52 = vector.load %arg3[%c1_29, %c1_30, %c0_31, %c0_32] : memref<2x3x16x16xf32, #tpu.memory_space<vmem>>, vector<1x1x16x16xf32>
    %53 = vector.shape_cast %52 : vector<1x1x16x16xf32> to vector<16x16xf32>
    %54 = vector.extract_strided_slice %47 {offsets = [0, 3], sizes = [16, 76], strides = [1, 1]} : vector<16x82xf32> to vector<16x76xf32>
    %cst_33 = arith.constant dense<0.000000e+00> : vector<16x76xf32>
    %55 = tpu.matmul %53, %54, %cst_33 {dimension_numbers = #tpu.dot_dimension_numbers<[1], [0], [0], [1], [0, 0, 1, 1], [], []>} : vector<16x16xf32>, vector<16x76xf32>, vector<16x76xf32> -> vector<16x76xf32>
    %56 = arith.addf %51, %55 : vector<16x76xf32>
    %c1_34 = arith.constant 1 : index
    %c2_35 = arith.constant 2 : index
    %c0_36 = arith.constant 0 : index
    %c0_37 = arith.constant 0 : index
    %57 = vector.load %arg3[%c1_34, %c2_35, %c0_36, %c0_37] : memref<2x3x16x16xf32, #tpu.memory_space<vmem>>, vector<1x1x16x16xf32>
    %58 = vector.shape_cast %57 : vector<1x1x16x16xf32> to vector<16x16xf32>
    %59 = vector.extract_strided_slice %47 {offsets = [0, 6], sizes = [16, 76], strides = [1, 1]} : vector<16x82xf32> to vector<16x76xf32>
    %cst_38 = arith.constant dense<0.000000e+00> : vector<16x76xf32>
    %60 = tpu.matmul %58, %59, %cst_38 {dimension_numbers = #tpu.dot_dimension_numbers<[1], [0], [0], [1], [0, 0, 1, 1], [], []>} : vector<16x16xf32>, vector<16x76xf32>, vector<16x76xf32> -> vector<16x76xf32>
    %61 = arith.addf %56, %60 : vector<16x76xf32>
    %c1_39 = arith.constant 1 : index
    %c0_40 = arith.constant 0 : index
    %c0_41 = arith.constant 0 : index
    %62 = vector.load %arg4[%c1_39, %c0_40, %c0_41] : memref<2x16x1xf32, #tpu.memory_space<vmem>>, vector<1x16x1xf32>
    %63 = vector.shape_cast %62 : vector<1x16x1xf32> to vector<16x1xf32>
    %64 = vector.broadcast %63 : vector<16x1xf32> to vector<16x76xf32>
    %65 = arith.addf %61, %64 : vector<16x76xf32>
    %66 = vector.extract_strided_slice %16 {offsets = [0, 4], sizes = [1, 76], strides = [1, 1]} : vector<1x84xf32> to vector<1x76xf32>
    %67 = vector.broadcast %66 : vector<1x76xf32> to vector<16x76xf32>
    %68 = arith.mulf %65, %67 : vector<16x76xf32>
    %69 = vector.extract_strided_slice %5 {offsets = [0, 4], sizes = [16, 76], strides = [1, 1]} : vector<16x84xf32> to vector<16x76xf32>
    %70 = arith.addf %68, %69 : vector<16x76xf32>
    %cst_42 = arith.constant 0.000000e+00 : f32
    %71 = vector.broadcast %cst_42 : f32 to vector<16x76xf32>
    %72 = arith.cmpf oge, %70, %71 : vector<16x76xf32>
    %cst_43 = arith.constant 1.000000e-01 : f32
    %73 = vector.broadcast %cst_43 : f32 to vector<16x76xf32>
    %74 = arith.mulf %73, %70 : vector<16x76xf32>
    %75 = arith.select %72, %70, %74 : vector<16x76xi1>, vector<16x76xf32>
    %c0_44 = arith.constant 0 : index
    %c0_45 = arith.constant 0 : index
    %c0_46 = arith.constant 0 : index
    %c0_47 = arith.constant 0 : index
    %76 = vector.load %arg5[%c0_44, %c0_45, %c0_46, %c0_47] : memref<2x5x16x16xf32, #tpu.memory_space<vmem>>, vector<1x1x16x16xf32>
    %77 = vector.shape_cast %76 : vector<1x1x16x16xf32> to vector<16x16xf32>
    %78 = vector.extract_strided_slice %75 {offsets = [0, 0], sizes = [16, 72], strides = [1, 1]} : vector<16x76xf32> to vector<16x72xf32>
    %cst_48 = arith.constant dense<0.000000e+00> : vector<16x72xf32>
    %79 = tpu.matmul %77, %78, %cst_48 {dimension_numbers = #tpu.dot_dimension_numbers<[1], [0], [0], [1], [0, 0, 1, 1], [], []>} : vector<16x16xf32>, vector<16x72xf32>, vector<16x72xf32> -> vector<16x72xf32>
    %c0_49 = arith.constant 0 : index
    %c1_50 = arith.constant 1 : index
    %c0_51 = arith.constant 0 : index
    %c0_52 = arith.constant 0 : index
    %80 = vector.load %arg5[%c0_49, %c1_50, %c0_51, %c0_52] : memref<2x5x16x16xf32, #tpu.memory_space<vmem>>, vector<1x1x16x16xf32>
    %81 = vector.shape_cast %80 : vector<1x1x16x16xf32> to vector<16x16xf32>
    %82 = vector.extract_strided_slice %75 {offsets = [0, 1], sizes = [16, 72], strides = [1, 1]} : vector<16x76xf32> to vector<16x72xf32>
    %cst_53 = arith.constant dense<0.000000e+00> : vector<16x72xf32>
    %83 = tpu.matmul %81, %82, %cst_53 {dimension_numbers = #tpu.dot_dimension_numbers<[1], [0], [0], [1], [0, 0, 1, 1], [], []>} : vector<16x16xf32>, vector<16x72xf32>, vector<16x72xf32> -> vector<16x72xf32>
    %84 = arith.addf %79, %83 : vector<16x72xf32>
    %c0_54 = arith.constant 0 : index
    %c2_55 = arith.constant 2 : index
    %c0_56 = arith.constant 0 : index
    %c0_57 = arith.constant 0 : index
    %85 = vector.load %arg5[%c0_54, %c2_55, %c0_56, %c0_57] : memref<2x5x16x16xf32, #tpu.memory_space<vmem>>, vector<1x1x16x16xf32>
    %86 = vector.shape_cast %85 : vector<1x1x16x16xf32> to vector<16x16xf32>
    %87 = vector.extract_strided_slice %75 {offsets = [0, 2], sizes = [16, 72], strides = [1, 1]} : vector<16x76xf32> to vector<16x72xf32>
    %cst_58 = arith.constant dense<0.000000e+00> : vector<16x72xf32>
    %88 = tpu.matmul %86, %87, %cst_58 {dimension_numbers = #tpu.dot_dimension_numbers<[1], [0], [0], [1], [0, 0, 1, 1], [], []>} : vector<16x16xf32>, vector<16x72xf32>, vector<16x72xf32> -> vector<16x72xf32>
    %89 = arith.addf %84, %88 : vector<16x72xf32>
    %c0_59 = arith.constant 0 : index
    %c3 = arith.constant 3 : index
    %c0_60 = arith.constant 0 : index
    %c0_61 = arith.constant 0 : index
    %90 = vector.load %arg5[%c0_59, %c3, %c0_60, %c0_61] : memref<2x5x16x16xf32, #tpu.memory_space<vmem>>, vector<1x1x16x16xf32>
    %91 = vector.shape_cast %90 : vector<1x1x16x16xf32> to vector<16x16xf32>
    %92 = vector.extract_strided_slice %75 {offsets = [0, 3], sizes = [16, 72], strides = [1, 1]} : vector<16x76xf32> to vector<16x72xf32>
    %cst_62 = arith.constant dense<0.000000e+00> : vector<16x72xf32>
    %93 = tpu.matmul %91, %92, %cst_62 {dimension_numbers = #tpu.dot_dimension_numbers<[1], [0], [0], [1], [0, 0, 1, 1], [], []>} : vector<16x16xf32>, vector<16x72xf32>, vector<16x72xf32> -> vector<16x72xf32>
    %94 = arith.addf %89, %93 : vector<16x72xf32>
    %c0_63 = arith.constant 0 : index
    %c4 = arith.constant 4 : index
    %c0_64 = arith.constant 0 : index
    %c0_65 = arith.constant 0 : index
    %95 = vector.load %arg5[%c0_63, %c4, %c0_64, %c0_65] : memref<2x5x16x16xf32, #tpu.memory_space<vmem>>, vector<1x1x16x16xf32>
    %96 = vector.shape_cast %95 : vector<1x1x16x16xf32> to vector<16x16xf32>
    %97 = vector.extract_strided_slice %75 {offsets = [0, 4], sizes = [16, 72], strides = [1, 1]} : vector<16x76xf32> to vector<16x72xf32>
    %cst_66 = arith.constant dense<0.000000e+00> : vector<16x72xf32>
    %98 = tpu.matmul %96, %97, %cst_66 {dimension_numbers = #tpu.dot_dimension_numbers<[1], [0], [0], [1], [0, 0, 1, 1], [], []>} : vector<16x16xf32>, vector<16x72xf32>, vector<16x72xf32> -> vector<16x72xf32>
    %99 = arith.addf %94, %98 : vector<16x72xf32>
    %c0_67 = arith.constant 0 : index
    %c0_68 = arith.constant 0 : index
    %c0_69 = arith.constant 0 : index
    %100 = vector.load %arg6[%c0_67, %c0_68, %c0_69] : memref<2x16x1xf32, #tpu.memory_space<vmem>>, vector<1x16x1xf32>
    %101 = vector.shape_cast %100 : vector<1x16x1xf32> to vector<16x1xf32>
    %102 = vector.broadcast %101 : vector<16x1xf32> to vector<16x72xf32>
    %103 = arith.addf %99, %102 : vector<16x72xf32>
    %104 = vector.extract_strided_slice %16 {offsets = [0, 6], sizes = [1, 72], strides = [1, 1]} : vector<1x84xf32> to vector<1x72xf32>
    %105 = vector.broadcast %104 : vector<1x72xf32> to vector<16x72xf32>
    %106 = arith.mulf %103, %105 : vector<16x72xf32>
    %cst_70 = arith.constant 0.000000e+00 : f32
    %107 = vector.broadcast %cst_70 : f32 to vector<16x72xf32>
    %108 = arith.cmpf oge, %106, %107 : vector<16x72xf32>
    %cst_71 = arith.constant 1.000000e-01 : f32
    %109 = vector.broadcast %cst_71 : f32 to vector<16x72xf32>
    %110 = arith.mulf %109, %106 : vector<16x72xf32>
    %111 = arith.select %108, %106, %110 : vector<16x72xi1>, vector<16x72xf32>
    %c1_72 = arith.constant 1 : index
    %c0_73 = arith.constant 0 : index
    %c0_74 = arith.constant 0 : index
    %c0_75 = arith.constant 0 : index
    %112 = vector.load %arg5[%c1_72, %c0_73, %c0_74, %c0_75] : memref<2x5x16x16xf32, #tpu.memory_space<vmem>>, vector<1x1x16x16xf32>
    %113 = vector.shape_cast %112 : vector<1x1x16x16xf32> to vector<16x16xf32>
    %114 = vector.extract_strided_slice %111 {offsets = [0, 0], sizes = [16, 64], strides = [1, 1]} : vector<16x72xf32> to vector<16x64xf32>
    %cst_76 = arith.constant dense<0.000000e+00> : vector<16x64xf32>
    %115 = tpu.matmul %113, %114, %cst_76 {dimension_numbers = #tpu.dot_dimension_numbers<[1], [0], [0], [1], [0, 0, 1, 1], [], []>} : vector<16x16xf32>, vector<16x64xf32>, vector<16x64xf32> -> vector<16x64xf32>
    %c1_77 = arith.constant 1 : index
    %c1_78 = arith.constant 1 : index
    %c0_79 = arith.constant 0 : index
    %c0_80 = arith.constant 0 : index
    %116 = vector.load %arg5[%c1_77, %c1_78, %c0_79, %c0_80] : memref<2x5x16x16xf32, #tpu.memory_space<vmem>>, vector<1x1x16x16xf32>
    %117 = vector.shape_cast %116 : vector<1x1x16x16xf32> to vector<16x16xf32>
    %118 = vector.extract_strided_slice %111 {offsets = [0, 2], sizes = [16, 64], strides = [1, 1]} : vector<16x72xf32> to vector<16x64xf32>
    %cst_81 = arith.constant dense<0.000000e+00> : vector<16x64xf32>
    %119 = tpu.matmul %117, %118, %cst_81 {dimension_numbers = #tpu.dot_dimension_numbers<[1], [0], [0], [1], [0, 0, 1, 1], [], []>} : vector<16x16xf32>, vector<16x64xf32>, vector<16x64xf32> -> vector<16x64xf32>
    %120 = arith.addf %115, %119 : vector<16x64xf32>
    %c1_82 = arith.constant 1 : index
    %c2_83 = arith.constant 2 : index
    %c0_84 = arith.constant 0 : index
    %c0_85 = arith.constant 0 : index
    %121 = vector.load %arg5[%c1_82, %c2_83, %c0_84, %c0_85] : memref<2x5x16x16xf32, #tpu.memory_space<vmem>>, vector<1x1x16x16xf32>
    %122 = vector.shape_cast %121 : vector<1x1x16x16xf32> to vector<16x16xf32>
    %123 = vector.extract_strided_slice %111 {offsets = [0, 4], sizes = [16, 64], strides = [1, 1]} : vector<16x72xf32> to vector<16x64xf32>
    %cst_86 = arith.constant dense<0.000000e+00> : vector<16x64xf32>
    %124 = tpu.matmul %122, %123, %cst_86 {dimension_numbers = #tpu.dot_dimension_numbers<[1], [0], [0], [1], [0, 0, 1, 1], [], []>} : vector<16x16xf32>, vector<16x64xf32>, vector<16x64xf32> -> vector<16x64xf32>
    %125 = arith.addf %120, %124 : vector<16x64xf32>
    %c1_87 = arith.constant 1 : index
    %c3_88 = arith.constant 3 : index
    %c0_89 = arith.constant 0 : index
    %c0_90 = arith.constant 0 : index
    %126 = vector.load %arg5[%c1_87, %c3_88, %c0_89, %c0_90] : memref<2x5x16x16xf32, #tpu.memory_space<vmem>>, vector<1x1x16x16xf32>
    %127 = vector.shape_cast %126 : vector<1x1x16x16xf32> to vector<16x16xf32>
    %128 = vector.extract_strided_slice %111 {offsets = [0, 6], sizes = [16, 64], strides = [1, 1]} : vector<16x72xf32> to vector<16x64xf32>
    %cst_91 = arith.constant dense<0.000000e+00> : vector<16x64xf32>
    %129 = tpu.matmul %127, %128, %cst_91 {dimension_numbers = #tpu.dot_dimension_numbers<[1], [0], [0], [1], [0, 0, 1, 1], [], []>} : vector<16x16xf32>, vector<16x64xf32>, vector<16x64xf32> -> vector<16x64xf32>
    %130 = arith.addf %125, %129 : vector<16x64xf32>
    %c1_92 = arith.constant 1 : index
    %c4_93 = arith.constant 4 : index
    %c0_94 = arith.constant 0 : index
    %c0_95 = arith.constant 0 : index
    %131 = vector.load %arg5[%c1_92, %c4_93, %c0_94, %c0_95] : memref<2x5x16x16xf32, #tpu.memory_space<vmem>>, vector<1x1x16x16xf32>
    %132 = vector.shape_cast %131 : vector<1x1x16x16xf32> to vector<16x16xf32>
    %133 = vector.extract_strided_slice %111 {offsets = [0, 8], sizes = [16, 64], strides = [1, 1]} : vector<16x72xf32> to vector<16x64xf32>
    %cst_96 = arith.constant dense<0.000000e+00> : vector<16x64xf32>
    %134 = tpu.matmul %132, %133, %cst_96 {dimension_numbers = #tpu.dot_dimension_numbers<[1], [0], [0], [1], [0, 0, 1, 1], [], []>} : vector<16x16xf32>, vector<16x64xf32>, vector<16x64xf32> -> vector<16x64xf32>
    %135 = arith.addf %130, %134 : vector<16x64xf32>
    %c1_97 = arith.constant 1 : index
    %c0_98 = arith.constant 0 : index
    %c0_99 = arith.constant 0 : index
    %136 = vector.load %arg6[%c1_97, %c0_98, %c0_99] : memref<2x16x1xf32, #tpu.memory_space<vmem>>, vector<1x16x1xf32>
    %137 = vector.shape_cast %136 : vector<1x16x1xf32> to vector<16x1xf32>
    %138 = vector.broadcast %137 : vector<16x1xf32> to vector<16x64xf32>
    %139 = arith.addf %135, %138 : vector<16x64xf32>
    %140 = vector.extract_strided_slice %16 {offsets = [0, 10], sizes = [1, 64], strides = [1, 1]} : vector<1x84xf32> to vector<1x64xf32>
    %141 = vector.broadcast %140 : vector<1x64xf32> to vector<16x64xf32>
    %142 = arith.mulf %139, %141 : vector<16x64xf32>
    %143 = vector.extract_strided_slice %70 {offsets = [0, 6], sizes = [16, 64], strides = [1, 1]} : vector<16x76xf32> to vector<16x64xf32>
    %144 = arith.addf %142, %143 : vector<16x64xf32>
    %c0_100 = arith.constant 0 : index
    %c0_101 = arith.constant 0 : index
    %c0_102 = arith.constant 0 : index
    %145 = vector.load %arg7[%c0_100, %c0_101, %c0_102] : memref<1x16x64xf32, #tpu.memory_space<vmem>>, vector<1x16x64xf32>
    %146 = vector.shape_cast %145 : vector<1x16x64xf32> to vector<16x64xf32>
    %147 = vector.shape_cast %144 : vector<16x64xf32> to vector<1x16x64xf32>
    tpu.vector_store %arg7[%c0_100, %c0_101, %c0_102], %147 {strides = array<i32>} : memref<1x16x64xf32, #tpu.memory_space<vmem>>, vector<1x16x64xf32>,
    return
  }
  func.func @transform_0(%arg0: i32, %arg1: i32) -> (i32, i32, i32) {
    %c0_i32 = arith.constant 0 : i32
    %c0_i32_0 = arith.constant 0 : i32
    return %arg0, %c0_i32, %arg1 : i32, i32, i32
  }
  func.func @transform_1(%arg0: i32, %arg1: i32) -> (i32, i32, i32, i32) {
    %c0_i32 = arith.constant 0 : i32
    %c0_i32_0 = arith.constant 0 : i32
    %c0_i32_1 = arith.constant 0 : i32
    %c0_i32_2 = arith.constant 0 : i32
    %c0_i32_3 = arith.constant 0 : i32
    return %c0_i32, %c0_i32_0, %c0_i32_1, %c0_i32_2 : i32, i32, i32, i32
  }
  func.func @transform_2(%arg0: i32, %arg1: i32) -> (i32, i32, i32) {
    %c0_i32 = arith.constant 0 : i32
    %c0_i32_0 = arith.constant 0 : i32
    %c0_i32_1 = arith.constant 0 : i32
    %c0_i32_2 = arith.constant 0 : i32
    return %c0_i32, %c0_i32_0, %c0_i32_1 : i32, i32, i32
  }
  func.func @transform_3(%arg0: i32, %arg1: i32) -> (i32, i32, i32, i32) {
    %c0_i32 = arith.constant 0 : i32
    %c0_i32_0 = arith.constant 0 : i32
    %c0_i32_1 = arith.constant 0 : i32
    %c0_i32_2 = arith.constant 0 : i32
    %c0_i32_3 = arith.constant 0 : i32
    return %c0_i32, %c0_i32_0, %c0_i32_1, %c0_i32_2 : i32, i32, i32, i32
  }
  func.func @transform_4(%arg0: i32, %arg1: i32) -> (i32, i32, i32) {
    %c0_i32 = arith.constant 0 : i32
    %c0_i32_0 = arith.constant 0 : i32
    %c0_i32_1 = arith.constant 0 : i32
    %c0_i32_2 = arith.constant 0 : i32
    return %c0_i32, %c0_i32_0, %c0_i32_1 : i32, i32, i32
  }
  func.func @transform_5(%arg0: i32, %arg1: i32) -> (i32, i32, i32) {
    %c0_i32 = arith.constant 0 : i32
    %c0_i32_0 = arith.constant 0 : i32
    return %arg0, %c0_i32, %arg1 : i32, i32, i32
  }
}

</mosaic_0001>

<bundles_post_ra>
// kernel: tpu_custom_call.1
= control target key start
LH: loop header
LB: loop body
LE: loop exit
PB: predicated region body
PF: predicated region fallthrough
CT: control target
= control target key end

     0   :  { %10 = vsyncpa [#allocation3], 0  ;;  %s2942_s0 = inlined_call_operand.vmem [shape: f32[2,16,64], index: 0, kind: input, shape index: {}]   ;;  %s2943_s1 = inlined_call_operand.hbm [shape: f32[2,3,16,16], index: 1, kind: input, shape index: {}]   ;;  %s2944_s2 = inlined_call_operand.vmem [shape: f32[2,16,1], index: 2, kind: input, shape index: {}]   ;;  %s2945_s3 = inlined_call_operand.hbm [shape: f32[2,5,16,16], index: 3, kind: input, shape index: {}]   ;;  %s2946_s4 = inlined_call_operand.vmem [shape: f32[2,16,1], index: 4, kind: input, shape index: {}]   ;;  %s2947_s5 = inlined_call_operand.hbm [shape: f32[2,16,64], index: 5, kind: output, shape index: {}]  }
   0x1   :  { %11 = vsyncpa [#allocation6], 0 }
   0x2   :  { %12 = vsyncpa [#allocation4], 0 }
   0x3   :  { %14 = vsyncpa [#allocation4 + $0x1], 0  ;;  %s2648_s18 = smov 0   ;;  %s2650_s19 = smov 0  }
   0x4   :  { %s2652_s20 = smov 0   ;;  %s2654_s21 = smov 0  }
   0x5   :  { %s2656_s22 = smov 0   ;;  %s2658_s23 = smov 0  }
   0x6 LB: > { %s1985_s24 = sadd.s32 4294967295, %s2599_s23   ;;  %s1986_s25 = sadd.s32 4294967294, %s2599_s23   ;;  %s2599_s23 = sphi %s2658_s23, %s20_s23   ;;  %s2595_s22 = sphi %s2656_s22, %s2968_s22   ;;  %s2591_s21 = sphi %s2654_s21, %s2967_s21   ;;  %s2587_s20 = sphi %s2652_s20, %s2966_s20   ;;  %s2583_s19 = sphi %s2650_s19, %s2965_s19   ;;  %s2579_s18 = sphi %s2648_s18, %s2964_s18  }
   0x7   : > { %s32_s26 = sadd.s32 1, %s2595_s22  ;;  %s153_s27 = sadd.s32 1, %s2587_s20 }
   0x8   : > { %p34_p0 = scmp.ge.s32.totalorder %s32_s26, 2  ;;  %p163_p1 = scmp.ne.s32.totalorder %s2587_s20, %s2583_s19 }
   0x9   : > { %p164_p2 = scmp.eq.s32.totalorder %s1985_s24, 1  ;;  %p169_p3 = scmp.ne.s32.totalorder %s2583_s19, %s2579_s18 }
   0xa   : > { %s2970_s26 = smov (%p34_p0, %s32_s26), 0  ;;  %p170_p5 = scmp.eq.s32.totalorder %s1986_s25, 1 }
   0xb   : > { %2953 = sst [smem:[#allocation11_spill]] %s2970_s26  ;;  %p2688_p4 = por %p164_p2, %p163_p1 }
   0xc   : > { %s148_s29 = ssub.s32 %s2595_s22, %s2970_s26  ;;  %p1987_p6 = scmp.ge.s32.totalorder %s2599_s23, 1 }
   0xd   : > { %s2954_s28 = scalar_select %p2688_p4, 1, 0 }
   0xe   : > { %p151_p7 = scmp.eq.s32.totalorder %s148_s29, 0  ;;  %p2695_p8 = por %p170_p5, %p169_p3 }
   0xf   : > { %p177_p9 = scmp.lt.s32.totalorder %s2599_s23, 3  ;;  %p2707_p11 = scmp.eq.s32.totalorder %s1985_s24, 0 }
  0x10   : > { %s2955_s30 = scalar_select %p2695_p8, 1, 0 }
  0x11   : > { %s2701_s6 = scalar_select %p151_p7, %s2587_s20, %s153_s27  }
  0x12   : > { %p2703_p10 = pnand %p1987_p6, %p177_p9  ;;  %s2601_s9 = smov [#allocation2]  }
  0x13   : > { %s2957_s8 = scalar_select %p2707_p11, 1, 0 }
  0x14   : > { %s2956_s7 = scalar_select %p2703_p10, 1, 0 }
  0x15   : > { %p2315_p12 = pneg %p2703_p10  ;;  %s189_s10 = sshll.u32 %s2601_s9, 4  ;;  %s190_s10 = int_to_ptr.vmem [resolvable:$true] %s189_s10 }
  0x16   : > { %s2602_s12 = smov [#allocation5]   ;;  %s2457_s16 = scalar_lea.hbm %s2943_s1, 1536 }
  0x17   : > { %p2715_p13 = pnand %p2707_p11, %p2315_p12  ;;  %s205_s13 = sshll.u32 %s2602_s12, 4  ;;  %s2719_s13 = int_to_ptr.vmem [resolvable:$true] %s205_s13 }
  0x18   : > { %p2458_p0 = scmp.ne.s32.totalorder %s2943_s1, %s2457_s16  ;;  %p2464_p5 = scmp.lt.u32.totalorder %s2457_s16, %s2943_s1 }
  0x19   : > { %p2459_p1 = pneg %p2715_p13 }
  0x1b   : > { %p2460_p2 = pnand %p2459_p1, %p2458_p0 }
  0x1d   : > { %p2461_p3 = pneg %p2460_p2 }
  0x1f   : > { %p2466_p6 = pnand %p2464_p5, %p2461_p3 }
  0x21   : > { %2469 = shalt.err (!%p2466_p6)
}
  0x22   : > { %s2470_s29 = scalar_lea.vmem %s190_s10, 1536  ;;  %p2478_p8 = scmp.lt.s32.totalorder %s190_s10, %s190_s10 }
  0x23   : > { %p2471_p7 = scmp.ne.s32.totalorder %s190_s10, %s2470_s29  ;;  %p2479_p4 = scmp.lt.s32.totalorder %s2470_s29, %s2470_s29 }
  0x25   : > { %p2473_p9 = pnand %p2471_p7, %p2459_p1  ;;  %p2480_p11 = por %p2479_p4, %p2478_p8 }
  0x27   : > { %p2474_p12 = pneg %p2473_p9 }
  0x29   : > { %p2481_p10 = pnand %p2480_p11, %p2474_p12 }
  0x2b   : > { %2484 = shalt.err (!%p2481_p10)
}
  0x2c   : > { %s2603_s9 = smov 128   ;;  %s2604_s12 = smov 8  }
  0x2d   : > { %2318 = dma.hbm_to_vmem [thread:$0]  (!%p2715_p13), %s2943_s1, 1536, %s190_s10, [#allocation3], %s2603_s9, %s2603_s9, %s2604_s12  }
  0x2e   : > { %s2485_s24 = scalar_lea.hbm %s2945_s3, 2560 }
  0x2f   : > { %p2486_p0 = scmp.ne.s32.totalorder %s2945_s3, %s2485_s24  ;;  %p2492_p10 = scmp.lt.u32.totalorder %s2485_s24, %s2945_s3 }
  0x31   : > { %p2488_p4 = pnand %p2486_p0, %p2459_p1 }
  0x33   : > { %p2489_p8 = pneg %p2488_p4 }
  0x35   : > { %p2494_p11 = pnand %p2492_p10, %p2489_p8 }
  0x37   : > { %2497 = shalt.err (!%p2494_p11)
}
  0x38   : > { %s2498_s10 = scalar_lea.vmem %s2719_s13, 2560  ;;  %p2506_p6 = scmp.lt.s32.totalorder %s2719_s13, %s2719_s13 }
  0x39   : > { %p2499_p2 = scmp.ne.s32.totalorder %s2719_s13, %s2498_s10  ;;  %p2507_p7 = scmp.lt.s32.totalorder %s2498_s10, %s2498_s10 }
  0x3b   : > { %p2501_p3 = pnand %p2499_p2, %p2459_p1  ;;  %p2508_p9 = por %p2507_p7, %p2506_p6 }
  0x3d   : > { %p2502_p5 = pneg %p2501_p3 }
  0x3f   : > { %p2509_p12 = pnand %p2508_p9, %p2502_p5 }
  0x41   : > { %2512 = shalt.err (!%p2509_p12)
}
  0x42   : > { %2321 = dma.hbm_to_vmem [thread:$0]  (!%p2715_p13), %s2945_s3, 2560, %s2719_s13, [#allocation6], %s2603_s9, %s2603_s9, %s2604_s12  }
  0x43   : > { %p2959_p0 = scmp.ne.s32.totalorder %s2956_s7, 0 }
  0x44   : > { %p2960_p4 = scmp.ne.s32.totalorder (!%p2959_p0), %s2957_s8, 0 }
  0x45   : > { %235 = sbr.rel (%p2959_p0) target bundleno = 1702 (0x6a6), region = 40 }
  0x4c   : > { %2566 = dma.done.wait (%p2960_p4), [#allocation3], 1536  }
  0x4d   : > { %2568 = vsyncadd (%p2960_p4), [#allocation3], 4294965760 }
  0x4e   : > { %2570 = dma.done.wait (%p2960_p4), [#allocation6], 2560  }
  0x4f   : > { %2572 = vsyncadd (%p2960_p4), [#allocation6], 4294964736  ;;  %p270_p1 = scmp.lt.s32.totalorder %s2591_s21, 1  ;;  %s2605_s15 = smov 10   ;;  %vm289_vm0 = vcmask 80896   ;;  %vm292_vm1 = vcmask 605184   ;;  %v296_v17 = vlaneseq }
  0x50   : > { %v314_v8 = vld [vmem:[#allocation2 + $0x10] sm:$0xff]  ;;  %vm324_vm2 = vcmask 130048   ;;  %s2606_s8 = smov 127   ;;  %s2607_s16 = smov 126   ;;  %v580_v15 = vld [vmem:[%s2944_s2 + $0x8] sm:$0xff]  ;;  %v579_v16 = vld [vmem:[%s2944_s2] sm:$0xff] }
  0x51   : > { %s271_s11 = scalar_select %p270_p1, %s2591_s21, 1  ;;  %2109 = vmatprep.mubr.msk.f32.mxu0 %vm324_vm2, %v314_v8  ;;  %v2608_v18 = vmov 0   ;;  %v297_v19 = vand.u32 127, %v296_v17  ;;  %v2609_v21 = vmov 0.0   ;;  %v315_v30 = vld [vmem:[#allocation2 + $0x18] sm:$0xff]  ;;  %v311_v31 = vld [vmem:[#allocation2] sm:$0xff] }
  0x52   : > { %2406 = vset.pattern.permute.xlu1 %v2608_v18  ;;  %2405 = vset.pattern.permute.xlu0 %v2608_v18  ;;  %v312_v33 = vld [vmem:[#allocation2 + $0x8] sm:$0xff]  ;;  %v488_v34 = vld [vmem:[#allocation2 + $0x20] sm:$0xff]  ;;  %s2610_s29 = smov 122   ;;  %s2611_s10 = smov 125   ;;  %v2011_v52 = vld [vmem:[%s2944_s2 + $0x18] sm:$0xff]  ;;  %vm1867_vm14 = vcmask 523264  }
  0x53   : > { %s2039_s13 = sshll.u32 %s271_s11, 4  ;;  %v299_v20 = vadd.s32 4294967286, %v297_v19  ;;  %v489_v35 = vld [vmem:[#allocation2 + $0x28] sm:$0xff]  ;;  %v609_v45 = vld [vmem:[#allocation2 + $0x40] sm:$0xff]  ;;  %v2010_v53 = vld [vmem:[%s2944_s2 + $0x10] sm:$0xff]  ;;  %s2612_s9 = smov 124  }
  0x54   : > { %s277_s12 = scalar_lea.vmem %s2942_s0, %s2039_s13  ;;  %2130 = vmatprep.mubr.msk.f32.mxu1 %vm324_vm2, %v609_v45  ;;  %v610_v61 = vld [vmem:[#allocation2 + $0x48] sm:$0xff]  ;;  %v606_v62 = vld [vmem:[#allocation2 + $0x30] sm:$0xff]  ;;  %s2614_s26 = smov 118  }
  0x55   : > { %v279_v0 = vld [vmem:[%s277_s12] sm:$0xff]  ;;  %v280_v1 = vld [vmem:[%s277_s12 + $0x8] sm:$0xff]  ;;  %vm300_vm5 = vcmp.ge.s32.totalorder %v299_v20, 0  ;;  %vm301_vm6 = vcmp.lt.s32.totalorder %v299_v20, 64  ;;  %s2040_s14 = sshll.u32 %s2591_s21, 8  ;;  %p2961_p8 = scmp.ne.s32.totalorder %s2954_s28, 0 }
  0x56   : > { %283 = vrot.lane.b32.xlu0 %v279_v0, %s2605_s15  ;;  %vm302_vm7 = vmand %vm300_vm5, %vm301_vm6  ;;  %v607_v0 = vld [vmem:[#allocation2 + $0x38] sm:$0xff]  ;;  %v1086_v45 = vld [vmem:[#allocation5 + $0x28] sm:$0xff]  ;;  %s2892_s12 = scalar_lea.hbm %s2947_s5, %s2040_s14  ;;  %s2615_s17 = smov [#allocation7]  }
  0x57   : > { %v2802_v22 = vsel %vm302_vm7, 1.0, %v2609_v21 }
  0x5a   : > { %285 = vrot.lane.b32.xlu0 %v280_v1, %s2605_s15  ;;  %v782_v1 = vld [vmem:[#allocation2 + $0x50] sm:$0xff] }
  0x5e   : > { %583 = vperm.xlu0 %2405, %v579_v16   ;;  %v912_v16 = vld [vmem:[#allocation5 + $0x10] sm:$0xff] }
  0xc8   : > { %v284_v2 = vpop.permute.xlu0 %283 }
  0xc9   : > { %v290_v3 = vsel %vm289_vm0, 0.0, %v284_v2  ;;  %v783_v2 = vld [vmem:[#allocation2 + $0x58] sm:$0xff] }
  0xca   : > { %v2783_v4 = vsel %vm292_vm1, %v290_v3, 0.0 }
  0xcb   : > { %v307_v6 = vmul.f32 0.1, %v2783_v4  ;;  %vm305_vm3 = vcmp.ge.f32.partialorder %v2783_v4, 0.0 }
  0xcc   : > { %v286_v5 = vpop.permute.xlu0 %285 }
  0xcd   : > { %v291_v7 = vsel %vm289_vm0, 0.0, %v286_v5  ;;  %v309_v11 = vsel %vm305_vm3, %v2783_v4, %v307_v6 }
  0xce   : > { %v2787_v9 = vsel %vm292_vm1, %v291_v7, 0.0 }
  0xcf   : > { %vm306_vm4 = vcmp.ge.f32.partialorder %v2787_v9, 0.0  ;;  %v308_v10 = vmul.f32 0.1, %v2787_v9 }
  0xd1   : > { %v310_v12 = vsel %vm306_vm4, %v2787_v9, %v308_v10 }
  0xd2   : > { %v2395_v13 = vpack.i.bf16 %v310_v12, %v309_v11  ;;  %v2221_v14 = vpack.c.bf16 %v310_v12, %v309_v11 }
  0xd4   : > { %2396 = vrot.lane.b32.xlu1 %v2395_v13, %s2606_s8 }
  0xd8   : > { %2401 = vrot.lane.b32.xlu1 %v2395_v13, %s2607_s16 }
  0xdc   : > { %588 = vperm.xlu1 %2406, %v580_v15  }
  0xdd   : > { %v584_v37 = vpop.permute.xlu0 %583 }
  0xe0   : > { %594 = vrot.lane.b32.xlu1 %v2802_v22, %s2606_s8 }
 0x146   : > { %v2397_v23 = vpop.permute.xlu1 %2396 }
 0x147   : > { %v2399_v24 = vunpack.i.h.bf16 %v2397_v23  ;;  %v2398_v25 = vunpack.i.l.bf16 %v2397_v23 }
 0x149   : > { %v2217_v26 = vpack.c.bf16 %v2399_v24, %v2398_v25  ;;  %v1361_v24 = vld [vmem:[%s2946_s4 + $0x8] sm:$0xff]  ;;  %v1360_v25 = vld [vmem:[%s2946_s4] sm:$0xff] }
 0x14a   : > { %v2402_v27 = vpop.permute.xlu1 %2401 }
 0x14b   : > { %v2404_v28 = vunpack.i.h.bf16 %v2402_v27  ;;  %v2403_v29 = vunpack.i.l.bf16 %v2402_v27  ;;  %2218 = vmatprep.subr.bf16.mxu0 %v2217_v26 }
 0x14c   : > { %2220 = vmatpush3.bf16.msra.mxu0 %v2217_v26 }
 0x14d   : > { %2222 = vmatprep.subr.bf16.mxu0 %v2221_v14  ;;  %v2225_v32 = vpack.c.bf16 %v2404_v28, %v2403_v29 }
 0x14f   : > { %2110 = vmatmul.mubr.msk.f32.vlgmr.msra.gmra.mrb[0].mxu0 %vm324_vm2, %v315_v30 }
 0x150   : > { %2224 = vmatpush3.bf16.msra.mxu0 %v2221_v14  ;;  %2116 = vmatprep.mubr.msk.f32.mxu0 %vm324_vm2, %v311_v31 }
 0x151   : > { %2226 = vmatprep.subr.bf16.mxu0 %v2225_v32 }
 0x157   : > { %2117 = vmatmul.mubr.msk.f32.vlgmr.msra.gmra.mrb[0].mxu0 %vm324_vm2, %v312_v33  ;;  %v913_v33 = vld [vmem:[#allocation5 + $0x18] sm:$0xff] }
 0x158   : > { %2228 = vmatpush3.bf16.msra.mxu0 %v2225_v32  ;;  %2123 = vmatprep.mubr.msk.f32.mxu0 %vm324_vm2, %v488_v34  ;;  %v909_v34 = vld [vmem:[#allocation5] sm:$0xff] }
 0x15b   : > { %v589_v36 = vpop.permute.xlu1 %588 }
 0x15f   : > { %2124 = vmatmul.mubr.msk.f32.vlgmr.msra.gmra.mrb[0].mxu0 %vm324_vm2, %v489_v35  ;;  %v595_v39 = vpop.permute.xlu1 %594 }
 0x160   : > { %2151 = vmatprep.mubr.msk.f32.mxu0 %vm324_vm2, %v912_v16 }
 0x232   : > { %v2125_v38 = vpop.f32.mrb[0].mxu0 }
 0x233   : > { %v592_v40 = vadd.f32 %v2125_v38, %v589_v36  ;;  %v568_v41 = vpop.f32.mrb[1].mxu0 }
 0x234   : > { %v591_v42 = vadd.f32 %v584_v37, %v568_v41 }
 0x235   : > { %v598_v43 = vmul.f32 %v595_v39, %v592_v40  ;;  %v1085_v40 = vld [vmem:[#allocation5 + $0x20] sm:$0xff] }
 0x236   : > { %v597_v44 = vmul.f32 %v595_v39, %v591_v42  ;;  %v910_v39 = vld [vmem:[#allocation5 + $0x8] sm:$0xff] }
 0x237   : > { %vm600_vm8 = vcmp.ge.f32.partialorder %v598_v43, 0.0  ;;  %v602_v46 = vmul.f32 0.1, %v598_v43 }
 0x238   : > { %vm599_vm9 = vcmp.ge.f32.partialorder %v597_v44, 0.0  ;;  %v601_v47 = vmul.f32 0.1, %v597_v44 }
 0x239   : > { %v604_v48 = vsel %vm600_vm8, %v598_v43, %v602_v46  ;;  %v1177_v46 = vld [vmem:[#allocation5 + $0x30] sm:$0xff] }
 0x23a   : > { %v603_v49 = vsel %vm599_vm9, %v597_v44, %v601_v47 }
 0x23b   : > { %v2412_v50 = vpack.i.bf16 %v604_v48, %v603_v49  ;;  %v2233_v51 = vpack.c.bf16 %v604_v48, %v603_v49  ;;  %v1178_v48 = vld [vmem:[#allocation5 + $0x38] sm:$0xff]  ;;  %v1269_v49 = vld [vmem:[#allocation5 + $0x40] sm:$0xff] }
 0x23d   : > { %2413 = vrot.lane.b32.xlu1 %v2412_v50, %s2610_s29  ;;  %2408 = vrot.lane.b32.xlu0 %v2412_v50, %s2611_s10  ;;  %v1270_v50 = vld [vmem:[#allocation5 + $0x48] sm:$0xff] }
 0x241   : > { %883 = vperm.xlu1 %2406, %v2011_v52   ;;  %878 = vperm.xlu0 %2405, %v2010_v53  }
 0x245   : > { %895 = vrot.lane.b32.xlu1 %v2783_v4, %s2612_s9  ;;  %888 = vrot.lane.b32.xlu0 %v2802_v22, %s2612_s9 }
 0x249   : > { %897 = vrot.lane.b32.xlu0 %v2787_v9, %s2612_s9 }
 0x2af   : > { %v2409_v54 = vpop.permute.xlu0 %2408  ;;  %v2414_v57 = vpop.permute.xlu1 %2413 }
 0x2b0   : > { %v2411_v55 = vunpack.i.h.bf16 %v2409_v54  ;;  %v2410_v56 = vunpack.i.l.bf16 %v2409_v54  ;;  %v2416_v59 = vunpack.i.h.bf16 %v2414_v57  ;;  %v2415_v60 = vunpack.i.l.bf16 %v2414_v57 }
 0x2b2   : > { %v2229_v58 = vpack.c.bf16 %v2411_v55, %v2410_v56  ;;  %v2237_v63 = vpack.c.bf16 %v2416_v59, %v2415_v60  ;;  %v1389_v60 = vld [vmem:[#allocation5 + $0x60] sm:$0xff] }
 0x2b4   : > { %2230 = vmatprep.subr.bf16.mxu1 %v2229_v58 }
 0x2b5   : > { %2232 = vmatpush3.bf16.msra.mxu1 %v2229_v58 }
 0x2b6   : > { %2234 = vmatprep.subr.bf16.mxu1 %v2233_v51 }
 0x2b8   : > { %2131 = vmatmul.mubr.msk.f32.vlgmr.msra.gmra.mrb[0].mxu1 %vm324_vm2, %v610_v61 }
 0x2b9   : > { %2236 = vmatpush3.bf16.msra.mxu1 %v2233_v51  ;;  %2137 = vmatprep.mubr.msk.f32.mxu1 %vm324_vm2, %v606_v62 }
 0x2ba   : > { %2238 = vmatprep.subr.bf16.mxu1 %v2237_v63 }
 0x2c0   : > { %2138 = vmatmul.mubr.msk.f32.vlgmr.msra.gmra.mrb[0].mxu1 %vm324_vm2, %v607_v0  ;;  %v879_v3 = vpop.permute.xlu0 %878  ;;  %v884_v5 = vpop.permute.xlu1 %883 }
 0x2c1   : > { %2240 = vmatpush3.bf16.msra.mxu1 %v2237_v63  ;;  %2144 = vmatprep.mubr.msk.f32.mxu1 %vm324_vm2, %v782_v1 }
 0x2c4   : > { %v889_v4 = vpop.permute.xlu0 %888  ;;  %v896_v13 = vpop.permute.xlu1 %895 }
 0x2c8   : > { %2145 = vmatmul.mubr.msk.f32.vlgmr.msra.gmra.mrb[0].mxu1 %vm324_vm2, %v783_v2  ;;  %v898_v11 = vpop.permute.xlu0 %897 }
 0x2c9   : > { %2186 = vmatprep.mubr.msk.f32.mxu1 %vm324_vm2, %v1389_v60 }
 0x39b   : > { %v2146_v6 = vpop.f32.mrb[0].mxu1 }
 0x39c   : > { %v887_v7 = vadd.f32 %v2146_v6, %v884_v5  ;;  %v862_v8 = vpop.f32.mrb[1].mxu1 }
 0x39d   : > { %v886_v9 = vadd.f32 %v879_v3, %v862_v8  ;;  %v2033_v3 = vld [vmem:[%s2946_s4 + $0x18] sm:$0xff] }
 0x39e   : > { %v892_v10 = vmul.f32 %v889_v4, %v887_v7 }
 0x39f   : > { %v891_v12 = vmul.f32 %v889_v4, %v886_v9  ;;  %v2032_v4 = vld [vmem:[%s2946_s4 + $0x10] sm:$0xff] }
 0x3a0   : > { %v2831_v14 = vadd.f32 %v898_v11, %v892_v10 }
 0x3a1   : > { %v2833_v15 = vadd.f32 %v896_v13, %v891_v12  ;;  %v1390_v12 = vld [vmem:[#allocation5 + $0x68] sm:$0xff]  ;;  %v1386_v13 = vld [vmem:[#allocation5 + $0x50] sm:$0xff] }
 0x3a2   : > { %v906_v17 = vmul.f32 0.1, %v2831_v14  ;;  %vm904_vm10 = vcmp.ge.f32.partialorder %v2831_v14, 0.0 }
 0x3a3   : > { %v905_v18 = vmul.f32 0.1, %v2833_v15  ;;  %vm903_vm11 = vcmp.ge.f32.partialorder %v2833_v15, 0.0 }
 0x3a4   : > { %v908_v19 = vsel %vm904_vm10, %v2831_v14, %v906_v17  ;;  %v1387_v17 = vld [vmem:[#allocation5 + $0x58] sm:$0xff] }
 0x3a5   : > { %v907_v20 = vsel %vm903_vm11, %v2833_v15, %v905_v18  ;;  %v1562_v18 = vld [vmem:[#allocation5 + $0x70] sm:$0xff] }
 0x3a6   : > { %v2422_v21 = vpack.i.bf16 %v908_v19, %v907_v20  ;;  %v2245_v23 = vpack.c.bf16 %v908_v19, %v907_v20 }
 0x3a8   : > { %2423 = vrot.lane.b32.xlu0 %v2422_v21, %s2607_s16  ;;  %2418 = vrot.lane.b32.xlu1 %v2422_v21, %s2606_s8  ;;  %s2613_s8 = smov 120  }
 0x3ac   : > { %2433 = vrot.lane.b32.xlu0 %v2422_v21, %s2612_s9  ;;  %2428 = vrot.lane.b32.xlu1 %v2422_v21, %s2611_s10 }
 0x3b0   : > { %1369 = vperm.xlu0 %2405, %v1361_v24   ;;  %1364 = vperm.xlu1 %2406, %v1360_v25   ;;  %v1563_v24 = vld [vmem:[#allocation5 + $0x78] sm:$0xff]  ;;  %v1654_v25 = vld [vmem:[#allocation5 + $0x80] sm:$0xff] }
 0x3b4   : > { %1374 = vrot.lane.b32.xlu1 %v2802_v22, %s2610_s29 }
 0x41a   : > { %v2419_v26 = vpop.permute.xlu1 %2418  ;;  %v2424_v29 = vpop.permute.xlu0 %2423 }
 0x41b   : > { %v2421_v27 = vunpack.i.h.bf16 %v2419_v26  ;;  %v2420_v28 = vunpack.i.l.bf16 %v2419_v26  ;;  %v2426_v31 = vunpack.i.h.bf16 %v2424_v29  ;;  %v2425_v32 = vunpack.i.l.bf16 %v2424_v29  ;;  %v1747_v29 = vld [vmem:[#allocation5 + $0x98] sm:$0xff] }
 0x41d   : > { %v2241_v30 = vpack.c.bf16 %v2421_v27, %v2420_v28  ;;  %v2249_v35 = vpack.c.bf16 %v2426_v31, %v2425_v32  ;;  %v1655_v27 = vld [vmem:[#allocation5 + $0x88] sm:$0xff]  ;;  %v1746_v28 = vld [vmem:[#allocation5 + $0x90] sm:$0xff] }
 0x41e   : > { %v2429_v36 = vpop.permute.xlu1 %2428  ;;  %v2434_v42 = vpop.permute.xlu0 %2433 }
 0x41f   : > { %2242 = vmatprep.subr.bf16.mxu0 %v2241_v30  ;;  %v2431_v37 = vunpack.i.h.bf16 %v2429_v36  ;;  %v2430_v38 = vunpack.i.l.bf16 %v2429_v36  ;;  %v2436_v43 = vunpack.i.h.bf16 %v2434_v42  ;;  %v2435_v44 = vunpack.i.l.bf16 %v2434_v42 }
 0x420   : > { %2244 = vmatpush3.bf16.msra.mxu0 %v2241_v30 }
 0x421   : > { %2246 = vmatprep.subr.bf16.mxu0 %v2245_v23  ;;  %v2253_v41 = vpack.c.bf16 %v2431_v37, %v2430_v38  ;;  %v2257_v47 = vpack.c.bf16 %v2436_v43, %v2435_v44 }
 0x423   : > { %2152 = vmatmul.mubr.msk.f32.vlgmr.msra.gmra.mrb[2].mxu0 %vm324_vm2, %v913_v33 }
 0x424   : > { %2248 = vmatpush3.bf16.msra.mxu0 %v2245_v23  ;;  %2158 = vmatprep.mubr.msk.f32.mxu0 %vm324_vm2, %v909_v34 }
 0x425   : > { %2250 = vmatprep.subr.bf16.mxu0 %v2249_v35 }
 0x42b   : > { %2159 = vmatmul.mubr.msk.f32.vlgmr.msra.gmra.mrb[2].mxu0 %vm324_vm2, %v910_v39 }
 0x42c   : > { %2252 = vmatpush3.bf16.msra.mxu0 %v2249_v35  ;;  %2165 = vmatprep.mubr.msk.f32.mxu0 %vm324_vm2, %v1085_v40 }
 0x42d   : > { %2254 = vmatprep.subr.bf16.mxu0 %v2253_v41 }
 0x42f   : > { %v1365_v51 = vpop.permute.xlu1 %1364  ;;  %v1370_v52 = vpop.permute.xlu0 %1369 }
 0x433   : > { %2166 = vmatmul.mubr.msk.f32.vlgmr.msra.gmra.mrb[2].mxu0 %vm324_vm2, %v1086_v45  ;;  %v1375_v54 = vpop.permute.xlu1 %1374 }
 0x434   : > { %2256 = vmatpush3.bf16.msra.mxu0 %v2253_v41  ;;  %2172 = vmatprep.mubr.msk.f32.mxu0 %vm324_vm2, %v1177_v46 }
 0x435   : > { %2258 = vmatprep.subr.bf16.mxu0 %v2257_v47 }
 0x43b   : > { %2173 = vmatmul.mubr.msk.f32.vlgmr.msra.gmra.mrb[2].mxu0 %vm324_vm2, %v1178_v48 }
 0x43c   : > { %2260 = vmatpush3.bf16.msra.mxu0 %v2257_v47  ;;  %2179 = vmatprep.mubr.msk.f32.mxu0 %vm324_vm2, %v1269_v49 }
 0x443   : > { %2180 = vmatmul.mubr.msk.f32.vlgmr.msra.gmra.mrb[2].mxu0 %vm324_vm2, %v1270_v50 }
 0x516   : > { %v2181_v53 = vpop.f32.mrb[2].mxu0 }
 0x517   : > { %v1373_v55 = vadd.f32 %v2181_v53, %v1370_v52  ;;  %v1349_v56 = vpop.f32.mrb[3].mxu0 }
 0x518   : > { %v1372_v57 = vadd.f32 %v1365_v51, %v1349_v56 }
 0x519   : > { %v1378_v58 = vmul.f32 %v1375_v54, %v1373_v55 }
 0x51a   : > { %v1377_v59 = vmul.f32 %v1375_v54, %v1372_v57 }
 0x51b   : > { %vm1380_vm12 = vcmp.ge.f32.partialorder %v1378_v58, 0.0  ;;  %v1382_v61 = vmul.f32 0.1, %v1378_v58 }
 0x51c   : > { %vm1379_vm13 = vcmp.ge.f32.partialorder %v1377_v59, 0.0  ;;  %v1381_v62 = vmul.f32 0.1, %v1377_v59 }
 0x51d   : > { %v1384_v63 = vsel %vm1380_vm12, %v1378_v58, %v1382_v61 }
 0x51e   : > { %v1383_v0 = vsel %vm1379_vm13, %v1377_v59, %v1381_v62 }
 0x51f   : > { %v2442_v1 = vpack.i.bf16 %v1384_v63, %v1383_v0  ;;  %v2265_v2 = vpack.c.bf16 %v1384_v63, %v1383_v0 }
 0x521   : > { %2443 = vrot.lane.b32.xlu1 %v2442_v1, %s2612_s9  ;;  %2438 = vrot.lane.b32.xlu0 %v2442_v1, %s2607_s16  ;;  %s267_s16 = sand.u32 1, %s2583_s19  }
 0x522   : > { %s2896_s21 = scalar_lea.sflag [#allocation4], %s267_s16 }
 0x525   : > { %2453 = vrot.lane.b32.xlu1 %v2442_v1, %s2613_s8  ;;  %2448 = vrot.lane.b32.xlu0 %v2442_v1, %s2610_s29  ;;  %s2517_s8 = sshll.u32 %s2615_s17, 4  ;;  %s2518_s8 = int_to_ptr.vmem [resolvable:$false] %s2517_s8 }
 0x526   : > { %s2519_s24 = scalar_lea.vmem %s2518_s8, 512 }
 0x529   : > { %1847 = vperm.xlu1 %2406, %v2033_v3   ;;  %1842 = vperm.xlu0 %2405, %v2032_v4  }
 0x52d   : > { %1859 = vrot.lane.b32.xlu1 %v2833_v15, %s2610_s29  ;;  %1852 = vrot.lane.b32.xlu0 %v2802_v22, %s2614_s26 }
 0x531   : > { %1861 = vrot.lane.b32.xlu0 %v2831_v14, %s2610_s29  ;;  %s1994_s29 = sshll.u32 %s267_s16, 4 }
 0x532   : > { %s269_s11 = scalar_lea.vmem [#allocation7], %s1994_s29 }
 0x533   : > { %s1885_s13 = sshll.u32 %s269_s11, 4  ;;  %s2894_s13 = int_to_ptr.vmem [resolvable:$true] %s1885_s13 }
 0x534   : > { %s2513_s15 = scalar_lea.vmem %s2894_s13, 256  ;;  %p2520_p2 = scmp.lt.s32.totalorder %s2894_s13, %s2518_s8 }
 0x535   : > { %p2514_p13 = scmp.ne.s32.totalorder %s2894_s13, %s2513_s15  ;;  %p2521_p3 = scmp.lt.s32.totalorder %s2519_s24, %s2513_s15 }
 0x537   : > { %p2515_p10 = pnand %p2514_p13, %p2961_p8  ;;  %p2522_p5 = por %p2521_p3, %p2520_p2 }
 0x539   : > { %p2516_p11 = pneg %p2515_p10 }
 0x53b   : > { %p2523_p6 = pnand %p2522_p5, %p2516_p11 }
 0x593   : > { %v2439_v5 = vpop.permute.xlu0 %2438  ;;  %v2444_v8 = vpop.permute.xlu1 %2443 }
 0x594   : > { %v2441_v6 = vunpack.i.h.bf16 %v2439_v5  ;;  %v2440_v7 = vunpack.i.l.bf16 %v2439_v5  ;;  %v2446_v10 = vunpack.i.h.bf16 %v2444_v8  ;;  %v2445_v11 = vunpack.i.l.bf16 %v2444_v8 }
 0x596   : > { %v2261_v9 = vpack.c.bf16 %v2441_v6, %v2440_v7  ;;  %v2269_v16 = vpack.c.bf16 %v2446_v10, %v2445_v11 }
 0x597   : > { %v2449_v15 = vpop.permute.xlu0 %2448  ;;  %v2454_v20 = vpop.permute.xlu1 %2453 }
 0x598   : > { %2262 = vmatprep.subr.bf16.mxu1 %v2261_v9  ;;  %v2451_v22 = vunpack.i.h.bf16 %v2449_v15  ;;  %v2450_v14 = vunpack.i.l.bf16 %v2449_v15  ;;  %v2456_v21 = vunpack.i.h.bf16 %v2454_v20  ;;  %v2455_v23 = vunpack.i.l.bf16 %v2454_v20 }
 0x599   : > { %2264 = vmatpush3.bf16.msra.mxu1 %v2261_v9 }
 0x59a   : > { %2266 = vmatprep.subr.bf16.mxu1 %v2265_v2  ;;  %v2273_v19 = vpack.c.bf16 %v2451_v22, %v2450_v14  ;;  %v2277_v26 = vpack.c.bf16 %v2456_v21, %v2455_v23 }
 0x59c   : > { %2187 = vmatmul.mubr.msk.f32.vlgmr.msra.gmra.mrb[2].mxu1 %vm324_vm2, %v1390_v12 }
 0x59d   : > { %2268 = vmatpush3.bf16.msra.mxu1 %v2265_v2  ;;  %2193 = vmatprep.mubr.msk.f32.mxu1 %vm324_vm2, %v1386_v13 }
 0x59e   : > { %2270 = vmatprep.subr.bf16.mxu1 %v2269_v16 }
 0x5a4   : > { %2194 = vmatmul.mubr.msk.f32.vlgmr.msra.gmra.mrb[2].mxu1 %vm324_vm2, %v1387_v17 }
 0x5a5   : > { %2272 = vmatpush3.bf16.msra.mxu1 %v2269_v16  ;;  %2200 = vmatprep.mubr.msk.f32.mxu1 %vm324_vm2, %v1562_v18 }
 0x5a6   : > { %2274 = vmatprep.subr.bf16.mxu1 %v2273_v19 }
 0x5a8   : > { %v1843_v30 = vpop.permute.xlu0 %1842  ;;  %v1848_v32 = vpop.permute.xlu1 %1847 }
 0x5ac   : > { %2201 = vmatmul.mubr.msk.f32.vlgmr.msra.gmra.mrb[2].mxu1 %vm324_vm2, %v1563_v24  ;;  %v1853_v31 = vpop.permute.xlu0 %1852  ;;  %v1860_v40 = vpop.permute.xlu1 %1859 }
 0x5ad   : > { %2276 = vmatpush3.bf16.msra.mxu1 %v2273_v19  ;;  %2207 = vmatprep.mubr.msk.f32.mxu1 %vm324_vm2, %v1654_v25 }
 0x5ae   : > { %2278 = vmatprep.subr.bf16.mxu1 %v2277_v26 }
 0x5b0   : > { %v1862_v38 = vpop.permute.xlu0 %1861 }
 0x5b4   : > { %2208 = vmatmul.mubr.msk.f32.vlgmr.msra.gmra.mrb[2].mxu1 %vm324_vm2, %v1655_v27 }
 0x5b5   : > { %2280 = vmatpush3.bf16.msra.mxu1 %v2277_v26  ;;  %2214 = vmatprep.mubr.msk.f32.mxu1 %vm324_vm2, %v1746_v28 }
 0x5bc   : > { %2215 = vmatmul.mubr.msk.f32.vlgmr.msra.gmra.mrb[2].mxu1 %vm324_vm2, %v1747_v29 }
 0x68f   : > { %v2216_v33 = vpop.f32.mrb[2].mxu1 }
 0x690   : > { %v1851_v34 = vadd.f32 %v2216_v33, %v1848_v32  ;;  %v1826_v35 = vpop.f32.mrb[3].mxu1 }
 0x691   : > { %v1850_v36 = vadd.f32 %v1843_v30, %v1826_v35 }
 0x692   : > { %v1856_v37 = vmul.f32 %v1853_v31, %v1851_v34 }
 0x693   : > { %v1855_v39 = vmul.f32 %v1853_v31, %v1850_v36 }
 0x694   : > { %v1866_v41 = vadd.f32 %v1862_v38, %v1856_v37 }
 0x695   : > { %v1865_v42 = vadd.f32 %v1860_v40, %v1855_v39 }
 0x696   : > { %1869 = vst.msk [vmem:[%s269_s11 + $0x8] sm:$0xff] %vm1867_vm14, %v1866_v41 }
 0x697   : > { %1868 = vst.msk [vmem:[%s269_s11] sm:$0xff] %vm1867_vm14, %v1865_v42 }
 0x698   : > { %2526 = shalt.err (!%p2523_p6)
}
 0x699   : > { %s2527_s25 = scalar_lea.hbm %s2892_s12, 256  ;;  %s2531_s26 = scalar_lea.hbm %s2947_s5, 512 }
 0x69a   : > { %p2528_p7 = scmp.ne.s32.totalorder %s2892_s12, %s2527_s25  ;;  %p2532_p0 = scmp.lt.u32.totalorder %s2892_s12, %s2947_s5 }
 0x69b   : > { %p2533_p4 = scmp.lt.u32.totalorder %s2531_s26, %s2527_s25  ;;  %p2535_p13 = scmp.lt.u32.totalorder %s2527_s25, %s2892_s12 }
 0x69c   : > { %p2529_p9 = pnand %p2528_p7, %p2961_p8 }
 0x69d   : > { %p2534_p1 = por %p2533_p4, %p2532_p0 }
 0x69e   : > { %p2530_p12 = pneg %p2529_p9 }
 0x69f   : > { %p2536_p10 = por %p2535_p13, %p2534_p1 }
 0x6a1   : > { %p2537_p11 = pnand %p2536_p10, %p2530_p12 }
 0x6a3   : > { %2540 = shalt.err (!%p2537_p11)
}
 0x6a4   : > { %s2616_s14 = smov 128   ;;  %s2617_s11 = smov 8  }
 0x6a5   : > { %2313 = dma.vmem_to_hbm [thread:$0]  (%p2961_p8), %s2894_s13, 256, %s2892_s12, %s2896_s21, %s2616_s14, %s2616_s14, %s2617_s11  }
 0x6a6 PF: > { %p2330_p2 = scmp.ge.s32.totalorder %s2599_s23, 2  ;;  %s1900_s9 = sand.u32 1, %s2579_s18  }
 0x6a7   : > { %p2962_p3 = scmp.ne.s32.totalorder %s2955_s30, 0  ;;  %s1901_s7 = scalar_lea.sflag [#allocation4], %s1900_s9 }
 0x6a9   : > { %p2323_p5 = pnand %p2330_p2, %p2962_p3 }
 0x6ab   : > { %2574 = dma.done.wait (!%p2323_p5), %s1901_s7, 256  }
 0x6ac   : > { %2576 = vsyncadd (!%p2323_p5), %s1901_s7, 4294967040  ;;  %s20_s23 = sadd.s32 1, %s2599_s23   ;;  %s2963_s28 = sld [smem:[#allocation11_spill]] }
 0x6ad   : > { %p17_p6 = scmp.ge.s32.totalorder %s20_s23, 4   ;;  %s2964_s18 = smov %s2583_s19 }
 0x6ae   : > { %s2965_s19 = smov %s2587_s20  ;;  %s2966_s20 = smov %s2701_s6 }
 0x6af   : > { %s2967_s21 = smov %s2595_s22  ;;  %19 = sbr.rel (!%p17_p6) target bundleno = 6 (0x6), region = 100 }
 0x6b2   : > { %s2968_s22 = smov %s2963_s28 }
 0x6b6   :  { %1906 = vsyncpa [#allocation3], 1 }
 0x6b7   :  { %1908 = vsyncpa [#allocation3 + $0x1], 1 }
 0x6b8   :  { %1909 = vsyncpa [#allocation6], 1 }
 0x6b9   :  { %1910 = vsyncpa [#allocation4], 1 }
 0x6ba   :  { %1912 = vsyncpa [#allocation4 + $0x1], 1 }

</bundles_post_ra>
